<compile_context>
chip_gen: v7x
topology: tpu7x:2x2x1
jax: 0.10.0
libtpu: 0.0.40
codegen_flags: <defaults>
</compile_context>

<pallas_src>
import functools

import jax
import jax.numpy as jnp
import numpy as np
from jax import lax
from jax.experimental import pallas as pl
from jax.experimental.pallas import tpu as pltpu

_HIGHEST = lax.Precision.HIGHEST


def rnn_decoder_kernel(z_ref, wz_ref, bz_ref, wrec_ref, brec_ref,
                       wout_ref, bout_ref, out_ref):
    batch = z_ref.shape[0]
    hidden = wrec_ref.shape[1]
    seq_len = wout_ref.shape[0] // hidden

    # Parameters are loaded once into vregs (< 150 KiB total at these shapes);
    # bias broadcasts are hoisted out of the unrolled time loop.
    w_rec = wrec_ref[...]                                        # [H, H]
    b_rec = jnp.broadcast_to(brec_ref[...], (batch, hidden))     # [B, H]

    # First hidden state: latent_to_hidden folded with the x_0 = 0 RNN step.
    # DEFAULT precision -> single-pass bf16 MXU (perf review item 1).
    h = jnp.tanh(
        jnp.dot(z_ref[...], wz_ref[...], preferred_element_type=jnp.float32)
        + jnp.broadcast_to(bz_ref[...], (batch, hidden)))

    # Strictly serial recurrence: h lives in vregs; ONLY the single h @ w_rec
    # matmul (one MXU pass) plus the EUP tanh is on the dependence chain.
    hs = [h]
    for t in range(1, seq_len):
        h = jnp.tanh(
            jnp.dot(h, w_rec, preferred_element_type=jnp.float32) + b_rec)
        hs.append(h)
    # TODO(synk): for production T replace the static unroll with
    # lax.fori_loop(..., unroll=4..8) and a T-chunked output BlockSpec.

    # Batched output projection, entirely off the recurrence: one
    # [B, T*H] x [T*H, T*O] block-diagonal matmul (single MXU push/pop) and a
    # single unmasked, lane-dense [B, T*O] store (T*O = 128 lanes here).
    h_all = jnp.concatenate(hs, axis=1)                          # [B, T*H]
    out_ref[...] = (
        jnp.dot(h_all, wout_ref[...], preferred_element_type=jnp.float32)
        + jnp.broadcast_to(bout_ref[...], (batch, out_ref.shape[1])))


def fold_params(params, seq_len):
    """One-time fold of all weights into the kernel's form.

    Hoisted out of the per-call path (perf review item 4): the transposes and
    fp32/HIGHEST folds below run once per parameter set, not per forward.
    """
    hidden = params["w_hh"].shape[0]
    obs = params["w_ho"].shape[0]

    # PyTorch layout is [out, in]; transpose once so the kernel computes x @ W.
    wl2h_t = params["w_l2h"].T                                   # [L, H]
    wih_t = params["w_ih"].T                                     # [O, H]
    whh_t = params["w_hh"].T                                     # [H, H]
    who_t = params["w_ho"].T                                     # [H, O]

    # Fold latent_to_hidden with the first (x_0 = 0) RNN step:
    #   h_1 = tanh(z @ (W_l2h^T W_hh^T) + b_l2h W_hh^T + b_ih + b_hh)
    w_z = jnp.dot(wl2h_t, whh_t, precision=_HIGHEST)             # [L, H]
    b_z = (jnp.dot(params["b_l2h"], whh_t, precision=_HIGHEST)
           + params["b_ih"] + params["b_hh"]).reshape(1, hidden)

    # Fold the output->input linear path into the hidden recurrence:
    #   h_{t+1} = tanh(h_t (W_hh^T + W_ho^T W_ih^T) + b_ih + b_hh + b_ho W_ih^T)
    w_rec = whh_t + jnp.dot(who_t, wih_t, precision=_HIGHEST)    # [H, H]
    b_rec = (params["b_ih"] + params["b_hh"]
             + jnp.dot(params["b_ho"], wih_t, precision=_HIGHEST)
             ).reshape(1, hidden)

    # Block-diagonal output projection so all T outputs come from ONE matmul
    # with a lane-dense [B, T*O] result:
    #   w_out[s*H + h, t*O + o] = W_ho^T[h, o] if s == t else 0
    w_out = jnp.kron(jnp.eye(seq_len, dtype=jnp.float32), who_t)  # [T*H, T*O]
    b_out = jnp.tile(params["b_ho"], seq_len).reshape(1, seq_len * obs)

    return {"w_z": w_z, "b_z": b_z, "w_rec": w_rec, "b_rec": b_rec,
            "w_out": w_out, "b_out": b_out}


@functools.partial(jax.jit, static_argnames=("seq_len",))
def rnn_decoder_forward(z, folded, seq_len):
    """z: [B, L] float32, folded = fold_params(...) -> [B, seq_len, O]."""
    batch = z.shape[0]
    obs = folded["b_out"].shape[1] // seq_len

    # TODO(synk): for production batch sizes on v7x, add a batch grid axis with
    # dimension_semantics=("parallel",) (or pl.core_map) so both TensorCores
    # split the batch, and keep a large w_rec resident in bf16 with
    # Buffered(1) + raised vmem_limit_bytes (64 MiB VMEM budget).
    vmem = pl.BlockSpec(memory_space=pltpu.MemorySpace.VMEM)
    out_flat = pl.pallas_call(
        rnn_decoder_kernel,
        out_shape=jax.ShapeDtypeStruct((batch, seq_len * obs), jnp.float32),
        in_specs=[vmem] * 7,
        out_specs=vmem,
    )(z, folded["w_z"], folded["b_z"], folded["w_rec"], folded["b_rec"],
      folded["w_out"], folded["b_out"])

    return out_flat.reshape(batch, seq_len, obs)


def init_params(key, latent_dim, hidden_dim, obs_dim):
    """Deterministic init mimicking PyTorch default uniform(-1/sqrt(fan_in), +)."""
    ks = jax.random.split(key, 8)

    def u(k, shape, fan_in):
        bound = 1.0 / np.sqrt(fan_in)
        return jax.random.uniform(k, shape, jnp.float32, -bound, bound)

    return {
        # latent_to_hidden: nn.Linear(latent_dim, hidden_dim)
        "w_l2h": u(ks[0], (hidden_dim, latent_dim), latent_dim),
        "b_l2h": u(ks[1], (hidden_dim,), latent_dim),
        # nn.RNN(input_size=obs_dim, hidden_size=hidden_dim, tanh)
        "w_ih": u(ks[2], (hidden_dim, obs_dim), hidden_dim),
        "b_ih": u(ks[3], (hidden_dim,), hidden_dim),
        "w_hh": u(ks[4], (hidden_dim, hidden_dim), hidden_dim),
        "b_hh": u(ks[5], (hidden_dim,), hidden_dim),
        # hidden_to_output: nn.Linear(hidden_dim, obs_dim)
        "w_ho": u(ks[6], (obs_dim, hidden_dim), hidden_dim),
        "b_ho": u(ks[7], (obs_dim,), hidden_dim),
    }


def reference_forward(z, params, seq_len):
    """Pure-JAX fp32/HIGHEST reference replicating the PyTorch loop step by step."""
    h = jnp.dot(z, params["w_l2h"].T, precision=_HIGHEST) + params["b_l2h"]
    x = jnp.zeros((z.shape[0], params["w_ho"].shape[0]), jnp.float32)
    outs = []
    for _ in range(seq_len):
        h = jnp.tanh(
            jnp.dot(x, params["w_ih"].T, precision=_HIGHEST) + params["b_ih"]
            + jnp.dot(h, params["w_hh"].T, precision=_HIGHEST) + params["b_hh"])
        y = jnp.dot(h, params["w_ho"].T, precision=_HIGHEST) + params["b_ho"]
        outs.append(y)
        x = y
    return jnp.stack(outs, axis=1)   # [B, T, O]


if __name__ == "__main__":
    # Small shapes consistent with the module's forward.
    batch = 2
    latent_dim = 8
    hidden_dim = 32
    obs_dim = 16
    seq_len = 8

    key = jax.random.PRNGKey(0)
    k_z, k_p = jax.random.split(key)
    z = jax.random.normal(k_z, (batch, latent_dim), jnp.float32)
    params = init_params(k_p, latent_dim, hidden_dim, obs_dim)

    # One-time weight folding (NOT on the per-call path).
    folded = jax.block_until_ready(fold_params(params, seq_len))

    out = jax.block_until_ready(rnn_decoder_forward(z, folded, seq_len))
    ref = jax.block_until_ready(reference_forward(z, params, seq_len))

    assert out.shape == (batch, seq_len, obs_dim), out.shape
    # The kernel's matmuls run at DEFAULT precision (single-pass bf16 MXU, per
    # the perf review); against the fp32/HIGHEST step-by-step reference this is
    # ~1e-3 relative per matmul, compounded over the 8-step serial recurrence,
    # so the tolerance is relaxed from the previous 1e-5.
    np.testing.assert_allclose(np.asarray(out), np.asarray(ref),
                               rtol=2e-2, atol=2e-2)
    print("KERNEL_OK")
</pallas_src>

<mosaic_0001>
module attributes {stable_mosaic.version = 11 : i64} {
  func.func @rnn_decoder_kernel(%arg0: memref<2x8xf32, #tpu.memory_space<vmem>>, %arg1: memref<8x32xf32, #tpu.memory_space<vmem>>, %arg2: memref<1x32xf32, #tpu.memory_space<vmem>>, %arg3: memref<32x32xf32, #tpu.memory_space<vmem>>, %arg4: memref<1x32xf32, #tpu.memory_space<vmem>>, %arg5: memref<256x128xf32, #tpu.memory_space<vmem>>, %arg6: memref<1x128xf32, #tpu.memory_space<vmem>>, %arg7: memref<2x128xf32, #tpu.memory_space<vmem>>) attributes {dimension_semantics = [], scalar_prefetch = 0 : i64, scratch_operands = 0 : i64, tpu.core_type = #tpu.core_type<tc>} {
    %c0 = arith.constant 0 : index
    %c0_0 = arith.constant 0 : index
    %0 = vector.load %arg3[%c0, %c0_0] : memref<32x32xf32, #tpu.memory_space<vmem>>, vector<32x32xf32>
    %c0_1 = arith.constant 0 : index
    %c0_2 = arith.constant 0 : index
    %1 = vector.load %arg4[%c0_1, %c0_2] : memref<1x32xf32, #tpu.memory_space<vmem>>, vector<1x32xf32>
    %2 = vector.shape_cast %1 : vector<1x32xf32> to vector<1x32xf32>
    %3 = vector.broadcast %2 : vector<1x32xf32> to vector<2x32xf32>
    %c0_3 = arith.constant 0 : index
    %c0_4 = arith.constant 0 : index
    %4 = vector.load %arg0[%c0_3, %c0_4] : memref<2x8xf32, #tpu.memory_space<vmem>>, vector<2x8xf32>
    %c0_5 = arith.constant 0 : index
    %c0_6 = arith.constant 0 : index
    %5 = vector.load %arg1[%c0_5, %c0_6] : memref<8x32xf32, #tpu.memory_space<vmem>>, vector<8x32xf32>
    %cst = arith.constant dense<0.000000e+00> : vector<2x32xf32>
    %6 = tpu.matmul %4, %5, %cst {dimension_numbers = #tpu.dot_dimension_numbers<[1], [0], [0], [1], [0, 0, 1, 1], [], []>} : vector<2x8xf32>, vector<8x32xf32>, vector<2x32xf32> -> vector<2x32xf32>
    %c0_7 = arith.constant 0 : index
    %c0_8 = arith.constant 0 : index
    %7 = vector.load %arg2[%c0_7, %c0_8] : memref<1x32xf32, #tpu.memory_space<vmem>>, vector<1x32xf32>
    %8 = vector.shape_cast %7 : vector<1x32xf32> to vector<1x32xf32>
    %9 = vector.broadcast %8 : vector<1x32xf32> to vector<2x32xf32>
    %10 = arith.addf %6, %9 : vector<2x32xf32>
    %11 = math.tanh %10 : vector<2x32xf32>
    %cst_9 = arith.constant dense<0.000000e+00> : vector<2x32xf32>
    %12 = tpu.matmul %11, %0, %cst_9 {dimension_numbers = #tpu.dot_dimension_numbers<[1], [0], [0], [1], [0, 0, 1, 1], [], []>} : vector<2x32xf32>, vector<32x32xf32>, vector<2x32xf32> -> vector<2x32xf32>
    %13 = arith.addf %12, %3 : vector<2x32xf32>
    %14 = math.tanh %13 : vector<2x32xf32>
    %cst_10 = arith.constant dense<0.000000e+00> : vector<2x32xf32>
    %15 = tpu.matmul %14, %0, %cst_10 {dimension_numbers = #tpu.dot_dimension_numbers<[1], [0], [0], [1], [0, 0, 1, 1], [], []>} : vector<2x32xf32>, vector<32x32xf32>, vector<2x32xf32> -> vector<2x32xf32>
    %16 = arith.addf %15, %3 : vector<2x32xf32>
    %17 = math.tanh %16 : vector<2x32xf32>
    %cst_11 = arith.constant dense<0.000000e+00> : vector<2x32xf32>
    %18 = tpu.matmul %17, %0, %cst_11 {dimension_numbers = #tpu.dot_dimension_numbers<[1], [0], [0], [1], [0, 0, 1, 1], [], []>} : vector<2x32xf32>, vector<32x32xf32>, vector<2x32xf32> -> vector<2x32xf32>
    %19 = arith.addf %18, %3 : vector<2x32xf32>
    %20 = math.tanh %19 : vector<2x32xf32>
    %cst_12 = arith.constant dense<0.000000e+00> : vector<2x32xf32>
    %21 = tpu.matmul %20, %0, %cst_12 {dimension_numbers = #tpu.dot_dimension_numbers<[1], [0], [0], [1], [0, 0, 1, 1], [], []>} : vector<2x32xf32>, vector<32x32xf32>, vector<2x32xf32> -> vector<2x32xf32>
    %22 = arith.addf %21, %3 : vector<2x32xf32>
    %23 = math.tanh %22 : vector<2x32xf32>
    %cst_13 = arith.constant dense<0.000000e+00> : vector<2x32xf32>
    %24 = tpu.matmul %23, %0, %cst_13 {dimension_numbers = #tpu.dot_dimension_numbers<[1], [0], [0], [1], [0, 0, 1, 1], [], []>} : vector<2x32xf32>, vector<32x32xf32>, vector<2x32xf32> -> vector<2x32xf32>
    %25 = arith.addf %24, %3 : vector<2x32xf32>
    %26 = math.tanh %25 : vector<2x32xf32>
    %cst_14 = arith.constant dense<0.000000e+00> : vector<2x32xf32>
    %27 = tpu.matmul %26, %0, %cst_14 {dimension_numbers = #tpu.dot_dimension_numbers<[1], [0], [0], [1], [0, 0, 1, 1], [], []>} : vector<2x32xf32>, vector<32x32xf32>, vector<2x32xf32> -> vector<2x32xf32>
    %28 = arith.addf %27, %3 : vector<2x32xf32>
    %29 = math.tanh %28 : vector<2x32xf32>
    %cst_15 = arith.constant dense<0.000000e+00> : vector<2x32xf32>
    %30 = tpu.matmul %29, %0, %cst_15 {dimension_numbers = #tpu.dot_dimension_numbers<[1], [0], [0], [1], [0, 0, 1, 1], [], []>} : vector<2x32xf32>, vector<32x32xf32>, vector<2x32xf32> -> vector<2x32xf32>
    %31 = arith.addf %30, %3 : vector<2x32xf32>
    %32 = math.tanh %31 : vector<2x32xf32>
    %33 = tpu.concatenate %11, %14, %17, %20, %23, %26, %29, %32 in 1 : vector<2x32xf32>, vector<2x32xf32>, vector<2x32xf32>, vector<2x32xf32>, vector<2x32xf32>, vector<2x32xf32>, vector<2x32xf32>, vector<2x32xf32> -> vector<2x256xf32>
    %c0_16 = arith.constant 0 : index
    %c0_17 = arith.constant 0 : index
    %34 = vector.load %arg5[%c0_16, %c0_17] : memref<256x128xf32, #tpu.memory_space<vmem>>, vector<256x128xf32>
    %cst_18 = arith.constant dense<0.000000e+00> : vector<2x128xf32>
    %35 = tpu.matmul %33, %34, %cst_18 {dimension_numbers = #tpu.dot_dimension_numbers<[1], [0], [0], [1], [0, 0, 1, 1], [], []>} : vector<2x256xf32>, vector<256x128xf32>, vector<2x128xf32> -> vector<2x128xf32>
    %c0_19 = arith.constant 0 : index
    %c0_20 = arith.constant 0 : index
    %36 = vector.load %arg6[%c0_19, %c0_20] : memref<1x128xf32, #tpu.memory_space<vmem>>, vector<1x128xf32>
    %37 = vector.shape_cast %36 : vector<1x128xf32> to vector<1x128xf32>
    %38 = vector.broadcast %37 : vector<1x128xf32> to vector<2x128xf32>
    %39 = arith.addf %35, %38 : vector<2x128xf32>
    %c0_21 = arith.constant 0 : index
    %c0_22 = arith.constant 0 : index
    %40 = vector.load %arg7[%c0_21, %c0_22] : memref<2x128xf32, #tpu.memory_space<vmem>>, vector<2x128xf32>
    tpu.vector_store %arg7[%c0_21, %c0_22], %39 {strides = array<i32>} : memref<2x128xf32, #tpu.memory_space<vmem>>, vector<2x128xf32>,
    return
  }
}

</mosaic_0001>

<bundles_post_ra>
// kernel: rnn_decoder_forward.1
= control target key start
LH: loop header
LB: loop body
LE: loop exit
PB: predicated region body
PF: predicated region fallthrough
CT: control target
= control target key end

     0   :  { %12 = vsyncpa [#allocation3], 0  ;;  %s1351_s0 = inlined_call_operand.hbm [shape: f32[2,8], index: 0, kind: input, shape index: {}]   ;;  %s1352_s1 = inlined_call_operand.vmem [shape: f32[8,32], index: 1, kind: input, shape index: {}]   ;;  %s1353_s2 = inlined_call_operand.vmem [shape: f32[1,32], index: 2, kind: input, shape index: {}]   ;;  %s1354_s3 = inlined_call_operand.hbm [shape: f32[32,32], index: 3, kind: input, shape index: {}]   ;;  %s1355_s4 = inlined_call_operand.vmem [shape: f32[1,32], index: 4, kind: input, shape index: {}]   ;;  %s1356_s5 = inlined_call_operand.hbm [shape: f32[256,128], index: 5, kind: input, shape index: {}]   ;;  %s1357_s6 = inlined_call_operand.vmem [shape: f32[1,128], index: 6, kind: input, shape index: {}]   ;;  %s1358_s7 = inlined_call_operand.vmem [shape: f32[2,128], index: 7, kind: output, shape index: {}]  }
   0x1   :  { %13 = vsyncpa [#allocation5], 0  ;;  %s1173_s24 = smov [#allocation4]   ;;  %s1103_s28 = scalar_lea.hbm %s1354_s3, 512 }
   0x2   :  { %s33_s25 = sshll.u32 %s1173_s24, 4  ;;  %p1104_p0 = scmp.ne.s32.totalorder %s1354_s3, %s1103_s28  ;;  %s34_s25 = int_to_ptr.vmem [resolvable:$true] %s33_s25 }
   0x3   :  { %p1107_p1 = scmp.lt.u32.totalorder %s1103_s28, %s1354_s3 }
   0x5   :  { %p1109_p2 = pnand %p1107_p1, %p1104_p0 }
   0x7   :  { %1112 = shalt.err (!%p1109_p2)
}
   0x8   :  { %s1113_s10 = scalar_lea.vmem %s34_s25, 512  ;;  %p1118_p4 = scmp.lt.s32.totalorder %s34_s25, %s34_s25 }
   0x9   :  { %p1114_p3 = scmp.ne.s32.totalorder %s34_s25, %s1113_s10  ;;  %p1119_p5 = scmp.lt.s32.totalorder %s1113_s10, %s1113_s10 }
   0xb   :  { %p1120_p6 = por %p1119_p5, %p1118_p4 }
   0xd   :  { %p1121_p7 = pnand %p1120_p6, %p1114_p3 }
   0xf   :  { %1124 = shalt.err (!%p1121_p7)
}
  0x10   :  { %s1174_s11 = smov 128   ;;  %s1175_s12 = smov 8  }
  0x11   :  { %39 = dma.hbm_to_vmem [thread:$0]  %s1354_s3, 512, %s34_s25, [#allocation5], %s1174_s11, %s1174_s11, %s1175_s12  }
  0x12   :  { %s1176_s15 = smov [#allocation2]   ;;  %s1177_s17 = smov [#allocation6]  }
  0x13   :  { %s20_s16 = sshll.u32 %s1176_s15, 4  ;;  %s47_s18 = sshll.u32 %s1177_s17, 4  ;;  %s21_s16 = int_to_ptr.vmem [resolvable:$true] %s20_s16  ;;  %s48_s18 = int_to_ptr.vmem [resolvable:$true] %s47_s18 }
  0x14   :  { %s1125_s21 = scalar_lea.hbm %s1351_s0, 32 }
  0x15   :  { %p1126_p8 = scmp.ne.s32.totalorder %s1351_s0, %s1125_s21  ;;  %p1129_p9 = scmp.lt.u32.totalorder %s1125_s21, %s1351_s0 }
  0x17   :  { %p1131_p10 = pnand %p1129_p9, %p1126_p8 }
  0x19   :  { %1134 = shalt.err (!%p1131_p10)
}
  0x1a   :  { %s1135_s3 = scalar_lea.vmem %s21_s16, 32  ;;  %p1140_p12 = scmp.lt.s32.totalorder %s21_s16, %s21_s16 }
  0x1b   :  { %p1136_p11 = scmp.ne.s32.totalorder %s21_s16, %s1135_s3  ;;  %p1141_p13 = scmp.lt.s32.totalorder %s1135_s3, %s1135_s3 }
  0x1d   :  { %p1142_p0 = por %p1141_p13, %p1140_p12 }
  0x1f   :  { %p1143_p1 = pnand %p1142_p0, %p1136_p11 }
  0x21   :  { %1146 = shalt.err (!%p1143_p1)
}
  0x22   :  { %23 = dma.hbm_to_vmem [thread:$0]  %s1351_s0, 32, %s21_s16, [#allocation3]  }
  0x23   :  { %s1147_s30 = scalar_lea.hbm %s1356_s5, 4096 }
  0x24   :  { %p1148_p2 = scmp.ne.s32.totalorder %s1356_s5, %s1147_s30  ;;  %p1151_p3 = scmp.lt.u32.totalorder %s1147_s30, %s1356_s5 }
  0x26   :  { %p1153_p4 = pnand %p1151_p3, %p1148_p2 }
  0x28   :  { %1156 = shalt.err (!%p1153_p4)
}
  0x29   :  { %s1157_s14 = scalar_lea.vmem %s48_s18, 4096  ;;  %p1162_p6 = scmp.lt.s32.totalorder %s48_s18, %s48_s18 }
  0x2a   :  { %p1158_p5 = scmp.ne.s32.totalorder %s48_s18, %s1157_s14  ;;  %p1163_p7 = scmp.lt.s32.totalorder %s1157_s14, %s1157_s14 }
  0x2c   :  { %p1164_p8 = por %p1163_p7, %p1162_p6 }
  0x2e   :  { %p1165_p9 = pnand %p1164_p8, %p1158_p5 }
  0x30   :  { %1168 = shalt.err (!%p1165_p9)
}
  0x31   :  { %53 = dma.hbm_to_vmem [thread:$0]  %s1356_s5, 4096, %s48_s18, [#allocation5], %s1174_s11, %s1174_s11, %s1175_s12  }
  0x32   :  { %1169 = dma.done.wait [#allocation3], 32  }
  0x33   :  { %1170 = vsyncadd [#allocation3], 4294967264 }
  0x34   :  { %1171 = dma.done.wait [#allocation5], 4608  }
  0x35   :  { %1172 = vsyncadd [#allocation5], 4294962688  ;;  %v1178_v0 = vmov 0.0   ;;  %vm1179_vm0 = vmmov 0   ;;  %vm85_vm1 = vcmask 64512   ;;  %v77_v1 = vld [vmem:[%s1352_s1] sm:$0xff] }
  0x36   :  { %905 = vmatprep.subr.mxu1 %v1178_v0  ;;  %907 = vmatprep.mubr.msk.f32.mxu1 %vm1179_vm0, %v1178_v0  ;;  %v76_v2 = vld [vmem:[#allocation2] sm:$0x3]  ;;  %v65_v3 = vld [vmem:[#allocation4] sm:$0xff]  ;;  %v66_v4 = vld [vmem:[#allocation4 + $0x8] sm:$0xff]  ;;  %v1180_v6 = vmov 0.0|0.0   ;;  %vm160_vm2 = vcmask 261120  }
  0x37   :  { %951 = vmatprep.mubr.msk.f32.mxu0 %vm1179_vm0, %v1178_v0  ;;  %906 = vmatpush3.msra.mxu1 %v77_v1  ;;  %v67_v5 = vld [vmem:[#allocation4 + $0x10] sm:$0xff]  ;;  %v1277_v7 = vpack.c.bf16 %v66_v4, %v65_v3  ;;  %v68_v8 = vld [vmem:[#allocation4 + $0x18] sm:$0xff]  ;;  %s1182_s12 = smov 64   ;;  %v722_v42 = vld [vmem:[#allocation6 + $0x80] sm:$0xff]  ;;  %s1183_s18 = smov 96   ;;  %vm699_vm3 = vcmask 523264  }
  0x38   :  { %908 = vmatmul.mubr.msk.f32.vlgmr.msra.gmra.mrb[0].mxu1 %vm85_vm1, %v76_v2  ;;  %987 = vmatprep.subr.bf16.mxu1 %v1180_v6  ;;  %v991_v9 = vpack.c.bf16 %v68_v8, %v67_v5  ;;  %v823_v10 = vld [vmem:[%s1353_s2] ss:$0 sm:$0xff]  ;;  %v723_v43 = vld [vmem:[#allocation6 + $0x88] sm:$0xff]  ;;  %v706_v44 = vld [vmem:[#allocation6] sm:$0xff]  ;;  %vm701_vm4 = vcmask 785408  }
  0x39   :  { %918 = vmatprep.mubr.msk.f32.mxu1 %vm1179_vm0, %v1178_v0  ;;  %1005 = vmatprep.subr.bf16.mxu0 %v1180_v6  ;;  %v1301_v15 = vld [vmem:[%s1355_s4] ss:$0 sm:$0xff]  ;;  %s1181_s4 = smov 32   ;;  %v1029_v45 = vpack.c.bf16 %v723_v43, %v722_v42  ;;  %v707_v46 = vld [vmem:[#allocation6 + $0x8] sm:$0xff]  ;;  %v725_v48 = vld [vmem:[#allocation6 + $0x98] sm:$0xff] }
  0x3a   :  { %989 = vmatpush3.bf16.msra.mxu1 %v1277_v7  ;;  %1007 = vmatpush3.bf16.msra.mxu0 %v1277_v7  ;;  %v724_v47 = vld [vmem:[#allocation6 + $0x90] sm:$0xff]  ;;  %v1031_v49 = vpack.c.bf16 %v707_v46, %v706_v44  ;;  %v709_v52 = vld [vmem:[#allocation6 + $0x18] sm:$0xff]  ;;  %v726_v53 = vld [vmem:[#allocation6 + $0xa0] sm:$0xff] }
  0x3b   :  { %990 = vmatprep.subr.bf16.mxu1 %v1180_v6  ;;  %1008 = vmatprep.subr.bf16.mxu0 %v1180_v6  ;;  %v1033_v50 = vpack.c.bf16 %v725_v48, %v724_v47  ;;  %v708_v51 = vld [vmem:[#allocation6 + $0x10] sm:$0xff]  ;;  %v727_v54 = vld [vmem:[#allocation6 + $0xa8] sm:$0xff]  ;;  %v710_v57 = vld [vmem:[#allocation6 + $0x20] sm:$0xff] }
  0x3c   :  { %v1035_v55 = vpack.c.bf16 %v709_v52, %v708_v51  ;;  %v1037_v56 = vpack.c.bf16 %v727_v54, %v726_v53  ;;  %v711_v58 = vld [vmem:[#allocation6 + $0x28] sm:$0xff]  ;;  %v728_v59 = vld [vmem:[#allocation6 + $0xb0] sm:$0xff]  ;;  %v729_v60 = vld [vmem:[#allocation6 + $0xb8] sm:$0xff] }
  0x3d   :  { %v1039_v61 = vpack.c.bf16 %v711_v58, %v710_v57  ;;  %v1041_v62 = vpack.c.bf16 %v729_v60, %v728_v59  ;;  %v712_v63 = vld [vmem:[#allocation6 + $0x30] sm:$0xff]  ;;  %v730_v1 = vld [vmem:[#allocation6 + $0xc0] sm:$0xff]  ;;  %v731_v2 = vld [vmem:[#allocation6 + $0xc8] sm:$0xff] }
  0x3e   :  { %992 = vmatpush3.bf16.msra.mxu1 %v991_v9  ;;  %1010 = vmatpush3.bf16.msra.mxu0 %v991_v9  ;;  %v1045_v4 = vpack.c.bf16 %v731_v2, %v730_v1  ;;  %v714_v5 = vld [vmem:[#allocation6 + $0x40] sm:$0xff]  ;;  %v733_v8 = vld [vmem:[#allocation6 + $0xd8] sm:$0xff] }
  0x3f   :  { %993 = vmatprep.subr.bf16.mxu1 %v1180_v6  ;;  %1017 = vmatprep.subr.bf16.mxu0 %v1180_v6 }
 0x10b   :  { %v155_v11 = vpop.f32.mrb[0].mxu1 }
 0x10c   :  { %v156_v12 = vadd.f32 %v823_v10, %v155_v11  ;;  %v909_v13 = vpop.f32.mrb[1].mxu1  ;;  %v716_v11 = vld [vmem:[#allocation6 + $0x50] sm:$0xff] }
 0x10d   :  { %v734_v13 = vld [vmem:[#allocation6 + $0xe0] sm:$0xff] }
 0x10e   :  { %1087 = vtanh.f32 %v156_v12  ;;  %v717_v12 = vld [vmem:[#allocation6 + $0x58] sm:$0xff] }
 0x118   :  { %v1289_v14 = vpop.eup %1087 }
 0x119   :  { %919 = vmatmul.mubr.msk.f32.vlgmr.msra.gmra.mrb[2].mxu1 %vm160_vm2, %v1289_v14 }
 0x11a   :  { %995 = vmatpush3.bf16.msra.mxu1 %v1277_v7  ;;  %929 = vmatprep.mubr.msk.f32.mxu1 %vm1179_vm0, %v1178_v0 }
 0x11b   :  { %996 = vmatprep.subr.bf16.mxu1 %v1180_v6 }
 0x11e   :  { %998 = vmatpush3.bf16.msra.mxu1 %v991_v9 }
 0x11f   :  { %999 = vmatprep.subr.bf16.mxu1 %v1180_v6 }
 0x1ec   :  { %v230_v16 = vpop.f32.mrb[2].mxu1 }
 0x1ed   :  { %v231_v17 = vadd.f32 %v1301_v15, %v230_v16  ;;  %v920_v18 = vpop.f32.mrb[3].mxu1  ;;  %v735_v16 = vld [vmem:[#allocation6 + $0xe8] sm:$0xff] }
 0x1ee   :  { %v1053_v18 = vpack.c.bf16 %v735_v16, %v734_v13 }
 0x1ef   :  { %1089 = vtanh.f32 %v231_v17  ;;  %v1051_v17 = vpack.c.bf16 %v717_v12, %v716_v11 }
 0x1f9   :  { %v1090_v19 = vpop.eup %1089 }
 0x1fa   :  { %930 = vmatmul.mubr.msk.f32.vlgmr.msra.gmra.mrb[4].mxu1 %vm160_vm2, %v1090_v19 }
 0x1fb   :  { %1001 = vmatpush3.bf16.msra.mxu1 %v1277_v7  ;;  %940 = vmatprep.mubr.msk.f32.mxu1 %vm1179_vm0, %v1178_v0 }
 0x1fc   :  { %1002 = vmatprep.subr.bf16.mxu1 %v1180_v6 }
 0x1ff   :  { %1004 = vmatpush3.bf16.msra.mxu1 %v991_v9 }
 0x200   :  { %1011 = vmatprep.subr.bf16.mxu1 %v1180_v6 }
 0x2cd   :  { %v304_v20 = vpop.f32.mrb[4].mxu1 }
 0x2ce   :  { %v305_v21 = vadd.f32 %v1301_v15, %v304_v20  ;;  %v931_v22 = vpop.f32.mrb[5].mxu1  ;;  %v719_v20 = vld [vmem:[#allocation6 + $0x68] sm:$0xff] }
 0x2d0   :  { %1091 = vtanh.f32 %v305_v21 }
 0x2da   :  { %v1092_v23 = vpop.eup %1091 }
 0x2db   :  { %941 = vmatmul.mubr.msk.f32.vlgmr.msra.gmra.mrb[6].mxu1 %vm160_vm2, %v1092_v23 }
 0x2dc   :  { %1013 = vmatpush3.bf16.msra.mxu1 %v1277_v7  ;;  %962 = vmatprep.mubr.msk.f32.mxu1 %vm1179_vm0, %v1178_v0 }
 0x2dd   :  { %1014 = vmatprep.subr.bf16.mxu1 %v1180_v6 }
 0x2e0   :  { %1016 = vmatpush3.bf16.msra.mxu1 %v991_v9 }
 0x2e1   :  { %1023 = vmatprep.subr.bf16.mxu1 %v1180_v6 }
 0x3ae   :  { %v378_v24 = vpop.f32.mrb[6].mxu1 }
 0x3af   :  { %v379_v25 = vadd.f32 %v1301_v15, %v378_v24  ;;  %v942_v26 = vpop.f32.mrb[7].mxu1  ;;  %v737_v24 = vld [vmem:[#allocation6 + $0xf8] sm:$0xff] }
 0x3b1   :  { %1093 = vtanh.f32 %v379_v25 }
 0x3bb   :  { %v1318_v27 = vpop.eup %1093 }
 0x3bc   :  { %952 = vmatmul.mubr.msk.f32.vlgmr.msra.gmra.mrb[0].mxu0 %vm160_vm2, %v1318_v27 }
 0x3bd   :  { %1019 = vmatpush3.bf16.msra.mxu0 %v1277_v7  ;;  %973 = vmatprep.mubr.msk.f32.mxu0 %vm1179_vm0, %v1178_v0 }
 0x3be   :  { %1020 = vmatprep.subr.bf16.mxu0 %v1180_v6 }
 0x3c1   :  { %1022 = vmatpush3.bf16.msra.mxu0 %v991_v9 }
 0x3c2   :  { %1030 = vmatprep.subr.bf16.mxu0 %v1029_v45 }
 0x48f   :  { %v452_v28 = vpop.f32.mrb[0].mxu0 }
 0x490   :  { %v453_v29 = vadd.f32 %v1301_v15, %v452_v28  ;;  %v953_v30 = vpop.f32.mrb[1].mxu0 }
 0x491   :  { %v721_v30 = vld [vmem:[#allocation6 + $0x78] sm:$0xff] }
 0x492   :  { %1095 = vtanh.f32 %v453_v29  ;;  %v720_v29 = vld [vmem:[#allocation6 + $0x70] sm:$0xff] }
 0x49c   :  { %v1327_v31 = vpop.eup %1095 }
 0x49d   :  { %963 = vmatmul.mubr.msk.f32.vlgmr.msra.gmra.mrb[8].mxu1 %vm160_vm2, %v1327_v31 }
 0x49e   :  { %1025 = vmatpush3.bf16.msra.mxu1 %v1277_v7  ;;  %984 = vmatprep.mubr.msk.f32.mxu1 %vm1179_vm0, %v1178_v0  ;;  %v713_v0 = vld [vmem:[#allocation6 + $0x38] sm:$0xff]  ;;  %v732_v7 = vld [vmem:[#allocation6 + $0xd0] sm:$0xff] }
 0x49f   :  { %1026 = vmatprep.subr.bf16.mxu1 %v1180_v6  ;;  %v1043_v3 = vpack.c.bf16 %v713_v0, %v712_v63  ;;  %v715_v6 = vld [vmem:[#allocation6 + $0x48] sm:$0xff]  ;;  %v1049_v10 = vpack.c.bf16 %v733_v8, %v732_v7 }
 0x4a2   :  { %1028 = vmatpush3.bf16.msra.mxu1 %v991_v9  ;;  %v1047_v9 = vpack.c.bf16 %v715_v6, %v714_v5 }
 0x570   :  { %v526_v32 = vpop.f32.mrb[8].mxu1 }
 0x571   :  { %v527_v33 = vadd.f32 %v1301_v15, %v526_v32  ;;  %v964_v34 = vpop.f32.mrb[9].mxu1  ;;  %v1059_v32 = vpack.c.bf16 %v721_v30, %v720_v29 }
 0x573   :  { %1097 = vtanh.f32 %v527_v33 }
 0x57d   :  { %v1098_v35 = vpop.eup %1097 }
 0x57e   :  { %974 = vmatmul.mubr.msk.f32.vlgmr.msra.gmra.mrb[2].mxu0 %vm160_vm2, %v1098_v35  ;;  %v1072_v36 = vpack.i.bf16 %v1090_v19, %v1098_v35  ;;  %v718_v19 = vld [vmem:[#allocation6 + $0x60] sm:$0xff] }
 0x57f   :  { %1032 = vmatpush3.bf16.msra.mxu0 %v1031_v49  ;;  %v1055_v21 = vpack.c.bf16 %v719_v20, %v718_v19  ;;  %v832_v49 = vld [vmem:[%s1357_s6] ss:$0 sm:$0xff] }
 0x580   :  { %1073 = vrot.lane.b32.xlu0 %v1072_v36, %s1181_s4  ;;  %1034 = vmatprep.subr.bf16.mxu0 %v1033_v50 }
 0x583   :  { %1036 = vmatpush3.bf16.msra.mxu0 %v1035_v55 }
 0x584   :  { %1038 = vmatprep.subr.bf16.mxu0 %v1037_v56 }
 0x587   :  { %1040 = vmatpush3.bf16.msra.mxu0 %v1039_v61 }
 0x588   :  { %1042 = vmatprep.subr.bf16.mxu0 %v1041_v62 }
 0x58b   :  { %1044 = vmatpush3.bf16.msra.mxu0 %v1043_v3 }
 0x58c   :  { %1046 = vmatprep.subr.bf16.mxu0 %v1045_v4 }
 0x58f   :  { %1048 = vmatpush3.bf16.msra.mxu0 %v1047_v9 }
 0x590   :  { %1050 = vmatprep.subr.bf16.mxu0 %v1049_v10 }
 0x593   :  { %1052 = vmatpush3.bf16.msra.mxu0 %v1051_v17 }
 0x594   :  { %1054 = vmatprep.subr.bf16.mxu0 %v1053_v18 }
 0x597   :  { %1056 = vmatpush3.bf16.msra.mxu0 %v1055_v21 }
 0x5f2   :  { %v1074_v35 = vpop.permute.xlu0 %1073 }
 0x651   :  { %v600_v37 = vpop.f32.mrb[2].mxu0 }
 0x652   :  { %v601_v38 = vadd.f32 %v1301_v15, %v600_v37  ;;  %v975_v39 = vpop.f32.mrb[3].mxu0  ;;  %v1076_v37 = vunpack.i.h.bf16 %v1074_v35 }
 0x654   :  { %1099 = vtanh.f32 %v601_v38  ;;  %v1075_v38 = vunpack.i.l.bf16 %v1074_v35 }
 0x656   :  { %v703_v44 = vsel %vm160_vm2, %v1327_v31, %v1075_v38 }
 0x65e   :  { %v1100_v40 = vpop.eup %1099 }
 0x65f   :  { %985 = vmatmul.mubr.msk.f32.vlgmr.msra.gmra.mrb[10].mxu1 %vm160_vm2, %v1100_v40  ;;  %v1077_v41 = vpack.i.bf16 %v1092_v23, %v1100_v40  ;;  %v736_v23 = vld [vmem:[#allocation6 + $0xf0] sm:$0xff] }
 0x660   :  { %v1057_v28 = vpack.c.bf16 %v737_v24, %v736_v23 }
 0x661   :  { %1078 = vrot.lane.b32.xlu0 %v1077_v41, %s1182_s12  ;;  %v698_v41 = vsel %vm160_vm2, %v1289_v14, %v1076_v37 }
 0x662   :  { %1058 = vmatprep.subr.bf16.mxu0 %v1057_v28 }
 0x663   :  { %1060 = vmatpush3.bf16.msra.mxu0 %v1059_v32 }
 0x6d3   :  { %v1079_v36 = vpop.permute.xlu0 %1078 }
 0x6d4   :  { %v1081_v39 = vunpack.i.h.bf16 %v1079_v36  ;;  %v1080_v40 = vunpack.i.l.bf16 %v1079_v36 }
 0x6d6   :  { %v704_v45 = vsel %vm699_vm3, %v703_v44, %v1080_v40 }
 0x732   :  { %v674_v22 = vpop.f32.mrb[10].mxu1 }
 0x733   :  { %v675_v25 = vadd.f32 %v1301_v15, %v674_v22  ;;  %v986_v26 = vpop.f32.mrb[11].mxu1 }
 0x735   :  { %1101 = vtanh.f32 %v675_v25 }
 0x73f   :  { %v1102_v33 = vpop.eup %1101 }
 0x740   :  { %v1082_v34 = vpack.i.bf16 %v1318_v27, %v1102_v33  ;;  %v700_v27 = vsel %vm699_vm3, %v698_v41, %v1081_v39 }
 0x742   :  { %1083 = vrot.lane.b32.xlu1 %v1082_v34, %s1183_s18 }
 0x7b4   :  { %v1084_v15 = vpop.permute.xlu1 %1083 }
 0x7b5   :  { %v1086_v42 = vunpack.i.h.bf16 %v1084_v15  ;;  %v1085_v43 = vunpack.i.l.bf16 %v1084_v15 }
 0x7b7   :  { %v705_v46 = vsel %vm701_vm4, %v704_v45, %v1085_v43  ;;  %v702_v47 = vsel %vm701_vm4, %v700_v27, %v1086_v42 }
 0x7b8   :  { %809 = vmatprep.mubr.f32.mxu0 %v705_v46 }
 0x7b9   :  { %810 = vmatmul.mubr.f32.vlgmr.msra.gmra.mrb[4].mxu0 %v702_v47 }
 0x88c   :  { %v902_v48 = vpop.f32.mrb[4].mxu0 }
 0x88d   :  { %v903_v50 = vpop.f32.mrb[5].mxu0 }
 0x88e   :  { %v904_v51 = vadd.f32 %v903_v50, %v902_v48 }
 0x890   :  { %v812_v52 = vadd.f32 %v904_v51, %v832_v49 }
 0x892   :  { %815 = vst [vmem:[%s1358_s7] sm:$0x3] %v812_v52 }
 0x893   :  { %820 = vsyncpa [#allocation3], 1 }
 0x894   :  { %821 = vsyncpa [#allocation5], 1 }

</bundles_post_ra>
